<compile_context>
chip_gen: v7x
topology: tpu7x:2x2x1
jax: 0.10.0
libtpu: 0.0.40
codegen_flags: <defaults>
</compile_context>

<pallas_src>
import functools

import jax
import jax.numpy as jnp
from jax import lax
from jax.experimental import pallas as pl
from jax.experimental.pallas import tpu as pltpu

_LANE = 128  # TPU vreg lane width; batch tiles are multiples of this.


def _mlp_kernel(x_ref, w1_ref, b1_ref, w2_ref, b2_ref, w3_ref, b3_ref,
                w4_ref, b4_ref, o_ref):
    """Fused 4-layer MLP on one (bt, F) batch tile, all f32.

    Batch sits on the 128-lane axis: layer 1 contracts on x's last (feature)
    dim so the intermediate is (out, batch) from the start, every matmul
    accumulates in f32 on the MXU, and the final (1, bt) store is lane-dense.
    """
    x = x_ref[...]                                              # (bt, 16) f32

    # Layer 1: W1 (32,16) contracted with x (bt,16) on the feature dim
    #          -> (32, bt).  No wrapper transpose; the MXU handles the
    #          "NT" contraction directly.
    h = lax.dot_general(w1_ref[...], x, (((1,), (1,)), ((), ())),
                        preferred_element_type=jnp.float32)
    h = jnp.maximum(h + b1_ref[...], 0.0)

    # Layer 2: (16,32) @ (32,bt) -> (16,bt)
    h = jnp.dot(w2_ref[...], h, preferred_element_type=jnp.float32)
    h = jnp.maximum(h + b2_ref[...], 0.0)

    # Layer 3: (8,16) @ (16,bt) -> (8,bt)
    h = jnp.dot(w3_ref[...], h, preferred_element_type=jnp.float32)
    h = jnp.maximum(h + b3_ref[...], 0.0)

    # Layer 4 (M=1, K=8) on the VPU/XLU: broadcast multiply + sublane reduce,
    # then bias + sigmoid (EUP).  Output block (1, bt) is lane-dense.
    z = jnp.sum(h * w4_ref[...], axis=0, keepdims=True) + b4_ref[...]
    o_ref[...] = jax.nn.sigmoid(z).astype(o_ref.dtype)


@functools.lru_cache(maxsize=1)
def _tensorcores_per_chip() -> int:
    """Best-effort TensorCore-per-chip count (2 on v7x, 1 on v5e/v6e).

    Defaults to 1 so single-TC chips never get a forced serial split.
    """
    try:
        info = pltpu.get_tpu_info()
        for attr in ("num_cores", "core_count", "tensorcore_count",
                     "num_tensorcores", "cores_per_chip"):
            val = getattr(info, attr, None)
            if isinstance(val, int) and val > 0:
                return val
    except Exception:
        pass
    return 1


def _choose_tiling(batch: int, batch_tile: int, n_tc: int):
    """Pick (tile_width, n_tiles); tile_width is a multiple of 128.

    Works in units of 128-lane blocks so no grid step is fully out of bounds.
    On multi-TC chips the tile count is rounded to a multiple of the TC count
    (when possible) so the 'parallel' grid axis load-balances across cores.
    """
    lane_blocks = pl.cdiv(batch, _LANE)
    tile_blocks = max(1, min(batch_tile // _LANE, lane_blocks))
    n_tiles = pl.cdiv(lane_blocks, tile_blocks)
    if n_tc > 1 and n_tiles % n_tc:
        for count in range(n_tc, lane_blocks + n_tc, n_tc):
            tb = pl.cdiv(lane_blocks, count)
            if pl.cdiv(lane_blocks, tb) % n_tc == 0:
                tile_blocks = tb
                n_tiles = pl.cdiv(lane_blocks, tb)
                break
    return tile_blocks * _LANE, n_tiles


@functools.partial(jax.jit, static_argnames=("batch_tile",))
def net_forward(x, params, *, batch_tile=512):
    """x: (B, features) float32; params: PyTorch-style (out,in) weights and
    (out,1) biases.  Returns (B, 1) float32, matching PyTorch `Net.forward`."""
    B, F = x.shape
    bt, n_tiles = _choose_tiling(B, batch_tile, _tensorcores_per_chip())

    # Layer-4 weight as a (8, 1) column (metadata-only reshape of (1, 8)).
    w4_col = jnp.reshape(params["w4"], (params["w4"].shape[1], 1))

    def full_spec(arr):
        # Tiny weight/bias blocks: full extent, constant block index.
        return pl.BlockSpec(arr.shape, lambda i: (0, 0))

    out_row = pl.pallas_call(
        _mlp_kernel,
        out_shape=jax.ShapeDtypeStruct((1, B), jnp.float32),
        grid_spec=pltpu.PrefetchScalarGridSpec(
            num_scalar_prefetch=0,
            grid=(n_tiles,),
            in_specs=[
                # x tile: ragged last block handled by Pallas (reads padded,
                # padded batch columns are independent and sliced off below).
                pl.BlockSpec((bt, F), lambda i: (i, 0)),
                full_spec(params["w1"]), full_spec(params["b1"]),
                full_spec(params["w2"]), full_spec(params["b2"]),
                full_spec(params["w3"]), full_spec(params["b3"]),
                full_spec(w4_col),       full_spec(params["b4"]),
            ],
            out_specs=pl.BlockSpec((1, bt), lambda i: (0, i)),   # lane-dense
        ),
        compiler_params=pltpu.CompilerParams(
            dimension_semantics=("parallel",)),
    )(x, params["w1"], params["b1"], params["w2"], params["b2"],
      params["w3"], params["b3"], w4_col, params["b4"])

    # (1, B) -> (B, 1): same flat order, metadata-only reshape.
    return jnp.reshape(out_row, (B, 1))


def init_params(key, features=16):
    """Mirror PyTorch nn.Linear default init: U[-1/sqrt(in), 1/sqrt(in)].

    Weights stored PyTorch-style as (out_features, in_features);
    biases as (out_features, 1) so they broadcast over the lane (batch) axis.
    """
    dims = [(features, 32), (32, 16), (16, 8), (8, 1)]
    params = {}
    for idx, (fan_in, fan_out) in enumerate(dims, start=1):
        key, kw, kb = jax.random.split(key, 3)
        bound = 1.0 / float(fan_in) ** 0.5
        params[f"w{idx}"] = jax.random.uniform(
            kw, (fan_out, fan_in), jnp.float32, -bound, bound)
        params[f"b{idx}"] = jax.random.uniform(
            kb, (fan_out, 1), jnp.float32, -bound, bound)
    return params


def reference_forward(x, params):
    h = jnp.maximum(x @ params["w1"].T + params["b1"].T, 0.0)
    h = jnp.maximum(h @ params["w2"].T + params["b2"].T, 0.0)
    h = jnp.maximum(h @ params["w3"].T + params["b3"].T, 0.0)
    return jax.nn.sigmoid(h @ params["w4"].T + params["b4"].T)


if __name__ == "__main__":
    key = jax.random.PRNGKey(0)
    key, kx = jax.random.split(key)

    features = 16
    batch = 300  # deliberately NOT a multiple of 128: exercises the ragged tile
    x = jax.random.normal(kx, (batch, features), jnp.float32)

    params = init_params(key, features=features)

    out = net_forward(x, params)
    out = jax.block_until_ready(out)

    ref = reference_forward(x, params)
    assert out.shape == (batch, 1), out.shape
    max_err = float(jnp.max(jnp.abs(out - ref)))
    # f32 throughout (f32 MXU accumulation): only tiny accumulation-order error.
    assert max_err < 1e-4, f"mismatch vs reference: max abs err {max_err}"

    print("KERNEL_OK")
</pallas_src>

<mosaic_0001>
module attributes {stable_mosaic.version = 11 : i64} {
  func.func @_mlp_kernel(%arg0: i32, %arg1: memref<384x16xf32, #tpu.memory_space<vmem>>, %arg2: memref<32x16xf32, #tpu.memory_space<vmem>>, %arg3: memref<32x1xf32, #tpu.memory_space<vmem>>, %arg4: memref<16x32xf32, #tpu.memory_space<vmem>>, %arg5: memref<16x1xf32, #tpu.memory_space<vmem>>, %arg6: memref<8x16xf32, #tpu.memory_space<vmem>>, %arg7: memref<8x1xf32, #tpu.memory_space<vmem>>, %arg8: memref<8x1xf32, #tpu.memory_space<vmem>>, %arg9: memref<1x1xf32, #tpu.memory_space<vmem>>, %arg10: memref<1x384xf32, #tpu.memory_space<vmem>>) attributes {dimension_semantics = [#tpu.dimension_semantics<parallel>], iteration_bounds = array<i64: 1>, scalar_prefetch = 0 : i64, scratch_operands = 0 : i64, tpu.core_type = #tpu.core_type<tc>, window_params = [{transform_indices = @transform_0, window_bounds = array<i64: 384, 16>}, {pipeline_mode = #tpu.pipeline_mode<synchronous>, transform_indices = @transform_1, window_bounds = array<i64: 32, 16>}, {pipeline_mode = #tpu.pipeline_mode<synchronous>, transform_indices = @transform_2, window_bounds = array<i64: 32, 1>}, {pipeline_mode = #tpu.pipeline_mode<synchronous>, transform_indices = @transform_3, window_bounds = array<i64: 16, 32>}, {pipeline_mode = #tpu.pipeline_mode<synchronous>, transform_indices = @transform_4, window_bounds = array<i64: 16, 1>}, {pipeline_mode = #tpu.pipeline_mode<synchronous>, transform_indices = @transform_5, window_bounds = array<i64: 8, 16>}, {pipeline_mode = #tpu.pipeline_mode<synchronous>, transform_indices = @transform_6, window_bounds = array<i64: 8, 1>}, {pipeline_mode = #tpu.pipeline_mode<synchronous>, transform_indices = @transform_7, window_bounds = array<i64: 8, 1>}, {pipeline_mode = #tpu.pipeline_mode<synchronous>, transform_indices = @transform_8, window_bounds = array<i64: 1, 1>}, {transform_indices = @transform_9, window_bounds = array<i64: 1, 384>}]} {
    %c0 = arith.constant 0 : index
    %c0_0 = arith.constant 0 : index
    %0 = vector.load %arg1[%c0, %c0_0] : memref<384x16xf32, #tpu.memory_space<vmem>>, vector<384x16xf32>
    %c0_1 = arith.constant 0 : index
    %c0_2 = arith.constant 0 : index
    %1 = vector.load %arg2[%c0_1, %c0_2] : memref<32x16xf32, #tpu.memory_space<vmem>>, vector<32x16xf32>
    %cst = arith.constant dense<0.000000e+00> : vector<32x384xf32>
    %2 = tpu.matmul %1, %0, %cst {dimension_numbers = #tpu.dot_dimension_numbers<[1], [1], [0], [0], [0, 0, 1, 0], [], []>} : vector<32x16xf32>, vector<384x16xf32>, vector<32x384xf32> -> vector<32x384xf32>
    %c0_3 = arith.constant 0 : index
    %c0_4 = arith.constant 0 : index
    %3 = vector.load %arg3[%c0_3, %c0_4] : memref<32x1xf32, #tpu.memory_space<vmem>>, vector<32x1xf32>
    %4 = vector.broadcast %3 : vector<32x1xf32> to vector<32x384xf32>
    %5 = arith.addf %2, %4 : vector<32x384xf32>
    %cst_5 = arith.constant 0.000000e+00 : f32
    %6 = vector.broadcast %cst_5 : f32 to vector<32x384xf32>
    %7 = arith.maximumf %5, %6 : vector<32x384xf32>
    %c0_6 = arith.constant 0 : index
    %c0_7 = arith.constant 0 : index
    %8 = vector.load %arg4[%c0_6, %c0_7] : memref<16x32xf32, #tpu.memory_space<vmem>>, vector<16x32xf32>
    %cst_8 = arith.constant dense<0.000000e+00> : vector<16x384xf32>
    %9 = tpu.matmul %8, %7, %cst_8 {dimension_numbers = #tpu.dot_dimension_numbers<[1], [0], [0], [1], [0, 0, 1, 1], [], []>} : vector<16x32xf32>, vector<32x384xf32>, vector<16x384xf32> -> vector<16x384xf32>
    %c0_9 = arith.constant 0 : index
    %c0_10 = arith.constant 0 : index
    %10 = vector.load %arg5[%c0_9, %c0_10] : memref<16x1xf32, #tpu.memory_space<vmem>>, vector<16x1xf32>
    %11 = vector.broadcast %10 : vector<16x1xf32> to vector<16x384xf32>
    %12 = arith.addf %9, %11 : vector<16x384xf32>
    %cst_11 = arith.constant 0.000000e+00 : f32
    %13 = vector.broadcast %cst_11 : f32 to vector<16x384xf32>
    %14 = arith.maximumf %12, %13 : vector<16x384xf32>
    %c0_12 = arith.constant 0 : index
    %c0_13 = arith.constant 0 : index
    %15 = vector.load %arg6[%c0_12, %c0_13] : memref<8x16xf32, #tpu.memory_space<vmem>>, vector<8x16xf32>
    %cst_14 = arith.constant dense<0.000000e+00> : vector<8x384xf32>
    %16 = tpu.matmul %15, %14, %cst_14 {dimension_numbers = #tpu.dot_dimension_numbers<[1], [0], [0], [1], [0, 0, 1, 1], [], []>} : vector<8x16xf32>, vector<16x384xf32>, vector<8x384xf32> -> vector<8x384xf32>
    %c0_15 = arith.constant 0 : index
    %c0_16 = arith.constant 0 : index
    %17 = vector.load %arg7[%c0_15, %c0_16] : memref<8x1xf32, #tpu.memory_space<vmem>>, vector<8x1xf32>
    %18 = vector.broadcast %17 : vector<8x1xf32> to vector<8x384xf32>
    %19 = arith.addf %16, %18 : vector<8x384xf32>
    %cst_17 = arith.constant 0.000000e+00 : f32
    %20 = vector.broadcast %cst_17 : f32 to vector<8x384xf32>
    %21 = arith.maximumf %19, %20 : vector<8x384xf32>
    %c0_18 = arith.constant 0 : index
    %c0_19 = arith.constant 0 : index
    %22 = vector.load %arg8[%c0_18, %c0_19] : memref<8x1xf32, #tpu.memory_space<vmem>>, vector<8x1xf32>
    %23 = vector.broadcast %22 : vector<8x1xf32> to vector<8x384xf32>
    %24 = arith.mulf %21, %23 : vector<8x384xf32>
    %cst_20 = arith.constant dense<0.000000e+00> : vector<384xf32>
    %25 = vector.multi_reduction <add>, %24, %cst_20 [0] : vector<8x384xf32> to vector<384xf32>
    %26 = vector.shape_cast %25 : vector<384xf32> to vector<1x384xf32>
    %c0_21 = arith.constant 0 : index
    %c0_22 = arith.constant 0 : index
    %27 = vector.load %arg9[%c0_21, %c0_22] : memref<1x1xf32, #tpu.memory_space<vmem>>, vector<1x1xf32>
    %28 = vector.broadcast %27 : vector<1x1xf32> to vector<1x384xf32>
    %29 = arith.addf %26, %28 : vector<1x384xf32>
    %30 = arith.negf %29 : vector<1x384xf32>
    %31 = math.exp %30 : vector<1x384xf32>
    %cst_23 = arith.constant 1.000000e+00 : f32
    %32 = vector.broadcast %cst_23 : f32 to vector<1x384xf32>
    %33 = arith.addf %32, %31 : vector<1x384xf32>
    %34 = arith.divf %32, %33 : vector<1x384xf32>
    %c0_24 = arith.constant 0 : index
    %c0_25 = arith.constant 0 : index
    %35 = vector.load %arg10[%c0_24, %c0_25] : memref<1x384xf32, #tpu.memory_space<vmem>>, vector<1x384xf32>
    tpu.vector_store %arg10[%c0_24, %c0_25], %34 {strides = array<i32>} : memref<1x384xf32, #tpu.memory_space<vmem>>, vector<1x384xf32>,
    return
  }
  func.func @transform_0(%arg0: i32) -> (i32, i32) {
    %c0_i32 = arith.constant 0 : i32
    %c0_i32_0 = arith.constant 0 : i32
    return %arg0, %c0_i32 : i32, i32
  }
  func.func @transform_1(%arg0: i32) -> (i32, i32) {
    %c0_i32 = arith.constant 0 : i32
    %c0_i32_0 = arith.constant 0 : i32
    %c0_i32_1 = arith.constant 0 : i32
    return %c0_i32, %c0_i32_0 : i32, i32
  }
  func.func @transform_2(%arg0: i32) -> (i32, i32) {
    %c0_i32 = arith.constant 0 : i32
    %c0_i32_0 = arith.constant 0 : i32
    %c0_i32_1 = arith.constant 0 : i32
    return %c0_i32, %c0_i32_0 : i32, i32
  }
  func.func @transform_3(%arg0: i32) -> (i32, i32) {
    %c0_i32 = arith.constant 0 : i32
    %c0_i32_0 = arith.constant 0 : i32
    %c0_i32_1 = arith.constant 0 : i32
    return %c0_i32, %c0_i32_0 : i32, i32
  }
  func.func @transform_4(%arg0: i32) -> (i32, i32) {
    %c0_i32 = arith.constant 0 : i32
    %c0_i32_0 = arith.constant 0 : i32
    %c0_i32_1 = arith.constant 0 : i32
    return %c0_i32, %c0_i32_0 : i32, i32
  }
  func.func @transform_5(%arg0: i32) -> (i32, i32) {
    %c0_i32 = arith.constant 0 : i32
    %c0_i32_0 = arith.constant 0 : i32
    %c0_i32_1 = arith.constant 0 : i32
    return %c0_i32, %c0_i32_0 : i32, i32
  }
  func.func @transform_6(%arg0: i32) -> (i32, i32) {
    %c0_i32 = arith.constant 0 : i32
    %c0_i32_0 = arith.constant 0 : i32
    %c0_i32_1 = arith.constant 0 : i32
    return %c0_i32, %c0_i32_0 : i32, i32
  }
  func.func @transform_7(%arg0: i32) -> (i32, i32) {
    %c0_i32 = arith.constant 0 : i32
    %c0_i32_0 = arith.constant 0 : i32
    %c0_i32_1 = arith.constant 0 : i32
    return %c0_i32, %c0_i32_0 : i32, i32
  }
  func.func @transform_8(%arg0: i32) -> (i32, i32) {
    %c0_i32 = arith.constant 0 : i32
    %c0_i32_0 = arith.constant 0 : i32
    %c0_i32_1 = arith.constant 0 : i32
    return %c0_i32, %c0_i32_0 : i32, i32
  }
  func.func @transform_9(%arg0: i32) -> (i32, i32) {
    %c0_i32 = arith.constant 0 : i32
    %c0_i32_0 = arith.constant 0 : i32
    return %c0_i32, %arg0 : i32, i32
  }
}

</mosaic_0001>

<bundles_post_ra>
// kernel: net_forward.1
= control target key start
LH: loop header
LB: loop body
LE: loop exit
PB: predicated region body
PF: predicated region fallthrough
CT: control target
= control target key end

     0   :  { %s1601_s0 = inlined_call_operand.vmem [shape: f32[300,16], index: 0, kind: input, shape index: {}]   ;;  %s1602_s1 = inlined_call_operand.vmem [shape: f32[32,16], index: 1, kind: input, shape index: {}]   ;;  %s1603_s2 = inlined_call_operand.vmem [shape: f32[32,1], index: 2, kind: input, shape index: {}]   ;;  %s1604_s3 = inlined_call_operand.vmem [shape: f32[16,32], index: 3, kind: input, shape index: {}]   ;;  %s1605_s4 = inlined_call_operand.vmem [shape: f32[16,1], index: 4, kind: input, shape index: {}]   ;;  %s1606_s5 = inlined_call_operand.vmem [shape: f32[8,16], index: 5, kind: input, shape index: {}]   ;;  %s1607_s6 = inlined_call_operand.vmem [shape: f32[8,1], index: 6, kind: input, shape index: {}]   ;;  %s1608_s7 = inlined_call_operand.vmem [shape: f32[8,1], index: 7, kind: input, shape index: {}]   ;;  %s1609_s8 = inlined_call_operand.<no memory space> [shape: f32[1,1], index: 8, kind: input, shape index: {}]   ;;  %s1610_s9 = inlined_call_operand.hbm [shape: f32[1,300], index: 9, kind: output, shape index: {}]  }
   0x1   :  { %v14_v0 = vstv %s1609_s8 }
   0x2   :  { %15 = vst [vmem:[#allocation2] sm:$0x1] %v14_v0 }
   0x3   :  { %v51_v1 = vld [vmem:[%s1601_s0 + $0x80] sm:$0xff]  ;;  %v52_v2 = vld [vmem:[%s1601_s0 + $0x88] sm:$0xff]  ;;  %vm111_vm0 = vcmask 130048   ;;  %v1244_v8 = vmov 0   ;;  %v53_v11 = vld [vmem:[%s1601_s0 + $0x90] sm:$0xff] }
   0x4   :  { %v67_v3 = vld [vmem:[%s1601_s0 + $0x100] sm:$0xff]  ;;  %v1081_v4 = vpack.c.bf16 %v52_v2, %v51_v1  ;;  %vm1314_vm1 = vmpackc.low %vm111_vm0, %vm111_vm0  ;;  %v68_v6 = vld [vmem:[%s1601_s0 + $0x108] sm:$0xff]  ;;  %1206 = vset.pattern.permute.xlu0 %v1244_v8  ;;  %1207 = vset.pattern.permute.xlu1 %v1244_v8 }
   0x5   :  { %v35_v7 = vld [vmem:[%s1601_s0] sm:$0xff]  ;;  %v1129_v9 = vpack.c.bf16 %v68_v6, %v67_v3  ;;  %v36_v10 = vld [vmem:[%s1601_s0 + $0x8] sm:$0xff]  ;;  %v54_v12 = vld [vmem:[%s1601_s0 + $0x98] sm:$0xff] }
   0x6   :  { %1083 = vmatprep.subr.msk.bf16.mxu0 %vm1314_vm1, %v1081_v4  ;;  %v1084_v13 = vpack.c.bf16 %v36_v10, %v35_v7  ;;  %v1087_v14 = vpack.c.bf16 %v54_v12, %v53_v11  ;;  %v69_v15 = vld [vmem:[%s1601_s0 + $0x110] sm:$0xff]  ;;  %v70_v16 = vld [vmem:[%s1601_s0 + $0x118] sm:$0xff]  ;;  %v55_v20 = vld [vmem:[%s1601_s0 + $0xa0] sm:$0xff] }
   0x7   :  { %1131 = vmatprep.subr.msk.bf16.mxu1 %vm1314_vm1, %v1129_v9  ;;  %v1135_v17 = vpack.c.bf16 %v70_v16, %v69_v15  ;;  %v37_v18 = vld [vmem:[%s1601_s0 + $0x10] sm:$0xff]  ;;  %v38_v19 = vld [vmem:[%s1601_s0 + $0x18] sm:$0xff]  ;;  %v56_v21 = vld [vmem:[%s1601_s0 + $0xa8] sm:$0xff] }
   0x8   :  { %1086 = vmatpush3.bf16.xpose.msk.msra.mxu0 %vm1314_vm1, %v1084_v13  ;;  %1134 = vmatpush3.bf16.xpose.msk.msra.mxu1 %vm1314_vm1, %v1129_v9  ;;  %v71_v22 = vld [vmem:[%s1601_s0 + $0x120] sm:$0xff]  ;;  %v72_v23 = vld [vmem:[%s1601_s0 + $0x128] sm:$0xff]  ;;  %v1090_v24 = vpack.c.bf16 %v38_v19, %v37_v18  ;;  %v1093_v25 = vpack.c.bf16 %v56_v21, %v55_v20  ;;  %v57_v29 = vld [vmem:[%s1601_s0 + $0xb0] sm:$0xff] }
   0x9   :  { %1089 = vmatprep.subr.msk.bf16.mxu0 %vm1314_vm1, %v1087_v14  ;;  %1137 = vmatprep.subr.msk.bf16.mxu1 %vm1314_vm1, %v1135_v17  ;;  %v1141_v26 = vpack.c.bf16 %v72_v23, %v71_v22  ;;  %v39_v27 = vld [vmem:[%s1601_s0 + $0x20] sm:$0xff]  ;;  %v40_v28 = vld [vmem:[%s1601_s0 + $0x28] sm:$0xff]  ;;  %v58_v30 = vld [vmem:[%s1601_s0 + $0xb8] sm:$0xff] }
   0xa   :  { %v73_v31 = vld [vmem:[%s1601_s0 + $0x130] sm:$0xff]  ;;  %v74_v32 = vld [vmem:[%s1601_s0 + $0x138] sm:$0xff]  ;;  %v1398_v33 = vld [vmem:[%s1602_s1] sm:$0xff]  ;;  %v1096_v34 = vpack.c.bf16 %v40_v28, %v39_v27  ;;  %v1099_v36 = vpack.c.bf16 %v58_v30, %v57_v29 }
   0xb   :  { %988 = vmatprep.mubr.msk.f32.mxu0 %vm111_vm0, %v1398_v33  ;;  %1057 = vmatprep.mubr.msk.f32.mxu1 %vm111_vm0, %v1398_v33  ;;  %v87_v35 = vld [vmem:[%s1603_s2] sm:$0xff]  ;;  %v1147_v37 = vpack.c.bf16 %v74_v32, %v73_v31  ;;  %v89_v38 = vld [vmem:[%s1603_s2 + $0x10] sm:$0xff]  ;;  %v88_v39 = vld [vmem:[%s1603_s2 + $0x8] sm:$0xff] }
   0xc   :  { %93 = vperm.xlu0 %1206, %v87_v35   ;;  %103 = vperm.xlu1 %1207, %v89_v38   ;;  %v90_v40 = vld [vmem:[%s1603_s2 + $0x18] sm:$0xff] }
  0x10   :  { %1092 = vmatpush3.bf16.xpose.msk.msra.mxu0 %vm1314_vm1, %v1090_v24  ;;  %1140 = vmatpush3.bf16.xpose.msk.msra.mxu1 %vm1314_vm1, %v1135_v17 }
  0x11   :  { %1095 = vmatprep.subr.msk.bf16.mxu0 %vm1314_vm1, %v1093_v25  ;;  %1143 = vmatprep.subr.msk.bf16.mxu1 %vm1314_vm1, %v1141_v26 }
  0x12   :  { %16 = vsyncpa [#allocation4], 0  ;;  %v41_v41 = vld [vmem:[%s1601_s0 + $0x30] sm:$0xff]  ;;  %v42_v42 = vld [vmem:[%s1601_s0 + $0x38] sm:$0xff]  ;;  %98 = vperm.xlu0 %1206, %v88_v39   ;;  %108 = vperm.xlu1 %1207, %v90_v40   ;;  %vm468_vm2 = vcmask 261120   ;;  %v1245_v25 = vmov 0.0  }
  0x13   :  { %v59_v43 = vld [vmem:[%s1601_s0 + $0xc0] sm:$0xff]  ;;  %v60_v44 = vld [vmem:[%s1601_s0 + $0xc8] sm:$0xff]  ;;  %v1102_v49 = vpack.c.bf16 %v42_v42, %v41_v41  ;;  %v61_v56 = vld [vmem:[%s1601_s0 + $0xd0] sm:$0xff]  ;;  %vm1247_vm3 = vmmov 0  }
  0x14   :  { %v75_v45 = vld [vmem:[%s1601_s0 + $0x140] sm:$0xff]  ;;  %v76_v46 = vld [vmem:[%s1601_s0 + $0x148] sm:$0xff]  ;;  %v1105_v50 = vpack.c.bf16 %v60_v44, %v59_v43  ;;  %v62_v57 = vld [vmem:[%s1601_s0 + $0xd8] sm:$0xff] }
  0x15   :  { %v456_v47 = vld [vmem:[%s1605_s4] sm:$0xff]  ;;  %v457_v48 = vld [vmem:[%s1605_s4 + $0x8] sm:$0xff]  ;;  %v1153_v51 = vpack.c.bf16 %v76_v46, %v75_v45  ;;  %v77_v58 = vld [vmem:[%s1601_s0 + $0x150] sm:$0xff]  ;;  %v1111_v62 = vpack.c.bf16 %v62_v57, %v61_v56 }
  0x16   :  { %460 = vperm.xlu0 %1206, %v456_v47   ;;  %465 = vperm.xlu1 %1207, %v457_v48   ;;  %v634_v52 = vld [vmem:[%s1607_s6] sm:$0xff]  ;;  %v44_v55 = vld [vmem:[%s1601_s0 + $0x48] sm:$0xff]  ;;  %v78_v59 = vld [vmem:[%s1601_s0 + $0x158] sm:$0xff] }
  0x17   :  { %v787_v53 = vld [vmem:[%s1608_s7] sm:$0xff]  ;;  %v1159_v63 = vpack.c.bf16 %v78_v59, %v77_v58  ;;  %v45_v0 = vld [vmem:[%s1601_s0 + $0x50] sm:$0xff]  ;;  %v46_v1 = vld [vmem:[%s1601_s0 + $0x58] sm:$0xff] }
  0x18   :  { %1098 = vmatpush3.bf16.xpose.msk.msra.mxu0 %vm1314_vm1, %v1096_v34  ;;  %1146 = vmatpush3.bf16.xpose.msk.msra.mxu1 %vm1314_vm1, %v1141_v26  ;;  %v43_v54 = vld [vmem:[%s1601_s0 + $0x40] sm:$0xff]  ;;  %v64_v3 = vld [vmem:[%s1601_s0 + $0xe8] sm:$0xff]  ;;  %v1114_v7 = vpack.c.bf16 %v46_v1, %v45_v0  ;;  %v65_v12 = vld [vmem:[%s1601_s0 + $0xf0] sm:$0xff] }
  0x19   :  { %1101 = vmatprep.subr.msk.bf16.mxu0 %vm1314_vm1, %v1099_v36  ;;  %1149 = vmatprep.subr.msk.bf16.mxu1 %vm1314_vm1, %v1147_v37  ;;  %v814_v60 = vld [vmem:[#allocation2] sm:$0x1]  ;;  %v1108_v61 = vpack.c.bf16 %v44_v55, %v43_v54  ;;  %v80_v6 = vld [vmem:[%s1601_s0 + $0x168] sm:$0xff]  ;;  %v66_v13 = vld [vmem:[%s1601_s0 + $0xf8] sm:$0xff] }
  0x1a   :  { %637 = vperm.xlu0 %1206, %v634_v52   ;;  %790 = vperm.xlu1 %1207, %v787_v53   ;;  %v63_v2 = vld [vmem:[%s1601_s0 + $0xe0] sm:$0xff]  ;;  %v48_v11 = vld [vmem:[%s1601_s0 + $0x68] sm:$0xff]  ;;  %v81_v14 = vld [vmem:[%s1601_s0 + $0x170] sm:$0xff]  ;;  %v1123_v17 = vpack.c.bf16 %v66_v13, %v65_v12 }
  0x1b   :  { %v79_v4 = vld [vmem:[%s1601_s0 + $0x160] sm:$0xff]  ;;  %v1117_v8 = vpack.c.bf16 %v64_v3, %v63_v2  ;;  %v82_v15 = vld [vmem:[%s1601_s0 + $0x178] sm:$0xff]  ;;  %v49_v19 = vld [vmem:[%s1601_s0 + $0x70] sm:$0xff] }
  0x1c   :  { %v1165_v9 = vpack.c.bf16 %v80_v6, %v79_v4  ;;  %v47_v10 = vld [vmem:[%s1601_s0 + $0x60] sm:$0xff]  ;;  %v1171_v18 = vpack.c.bf16 %v82_v15, %v81_v14  ;;  %v50_v20 = vld [vmem:[%s1601_s0 + $0x78] sm:$0xff]  ;;  %v84_v22 = vld [vmem:[%s1602_s1 + $0x8] sm:$0xff] }
  0x1d   :  { %v1120_v16 = vpack.c.bf16 %v48_v11, %v47_v10  ;;  %v1126_v21 = vpack.c.bf16 %v50_v20, %v49_v19  ;;  %v85_v23 = vld [vmem:[%s1602_s1 + $0x10] sm:$0xff]  ;;  %v86_v5 = vld [vmem:[%s1602_s1 + $0x18] sm:$0xff]  ;;  %v454_v24 = vld [vmem:[%s1604_s3] sm:$0xff]  ;;  %v1246_v10 = vmov 0.0|0.0  }
  0x1e   :  { %817 = vperm.xlu0 %1206, %v814_v60   ;;  %v455_v1 = vld [vmem:[%s1604_s3 + $0x8] sm:$0xff] }
  0x20   :  { %1104 = vmatpush3.bf16.xpose.msk.msra.mxu0 %vm1314_vm1, %v1102_v49  ;;  %1152 = vmatpush3.bf16.xpose.msk.msra.mxu1 %vm1314_vm1, %v1147_v37 }
  0x21   :  { %1107 = vmatprep.subr.msk.bf16.mxu0 %vm1314_vm1, %v1105_v50  ;;  %1155 = vmatprep.subr.msk.bf16.mxu1 %vm1314_vm1, %v1153_v51 }
  0x28   :  { %1110 = vmatpush3.bf16.xpose.msk.msra.mxu0 %vm1314_vm1, %v1108_v61  ;;  %1158 = vmatpush3.bf16.xpose.msk.msra.mxu1 %vm1314_vm1, %v1153_v51 }
  0x29   :  { %1113 = vmatprep.subr.msk.bf16.mxu0 %vm1314_vm1, %v1111_v62  ;;  %1161 = vmatprep.subr.msk.bf16.mxu1 %vm1314_vm1, %v1159_v63 }
  0x30   :  { %1116 = vmatpush3.bf16.xpose.msk.msra.mxu0 %vm1314_vm1, %v1114_v7  ;;  %1164 = vmatpush3.bf16.xpose.msk.msra.mxu1 %vm1314_vm1, %v1159_v63 }
  0x31   :  { %1119 = vmatprep.subr.msk.bf16.mxu0 %vm1314_vm1, %v1117_v8  ;;  %1167 = vmatprep.subr.msk.bf16.mxu1 %vm1314_vm1, %v1165_v9 }
  0x38   :  { %1122 = vmatpush3.bf16.xpose.msk.msra.mxu0 %vm1314_vm1, %v1120_v16  ;;  %1170 = vmatpush3.bf16.xpose.msk.msra.mxu1 %vm1314_vm1, %v1165_v9 }
  0x39   :  { %1125 = vmatprep.subr.msk.bf16.mxu0 %vm1314_vm1, %v1123_v17  ;;  %1173 = vmatprep.subr.msk.bf16.mxu1 %vm1314_vm1, %v1171_v18 }
  0x40   :  { %1128 = vmatpush3.bf16.xpose.msk.msra.mxu0 %vm1314_vm1, %v1126_v21  ;;  %1176 = vmatpush3.bf16.xpose.msk.msra.mxu1 %vm1314_vm1, %v1171_v18  ;;  %v633_v21 = vld [vmem:[%s1606_s5] sm:$0xff]  ;;  %s1249_s5 = smov [#allocation3]  }
  0x41   :  { %s883_s15 = sshll.u32 %s1249_s5, 4  ;;  %s884_s15 = int_to_ptr.vmem [resolvable:$true] %s883_s15 }
  0x42   :  { %s1220_s16 = scalar_lea.vmem %s884_s15, 48  ;;  %s1224_s8 = scalar_lea.vmem %s884_s15, 64 }
  0x43   :  { %p1221_p0 = scmp.ne.s32.totalorder %s884_s15, %s1220_s16  ;;  %p1225_p1 = scmp.lt.s32.totalorder %s884_s15, %s884_s15 }
  0x44   :  { %p1226_p2 = scmp.lt.s32.totalorder %s1224_s8, %s1220_s16 }
  0x46   :  { %p1227_p3 = por %p1226_p2, %p1225_p1 }
  0x47   :  { %989 = vmatmul.mubr.msk.f32.vlgmr.msra.gmra.mrb[0].mxu0 %vm111_vm0, %v1398_v33  ;;  %1058 = vmatmul.mubr.msk.f32.vlgmr.msra.gmra.mrb[0].mxu1 %vm111_vm0, %v84_v22 }
  0x48   :  { %990 = vmatprep.mubr.msk.f32.mxu0 %vm111_vm0, %v84_v22  ;;  %1060 = vmatprep.mubr.msk.f32.mxu1 %vm111_vm0, %v85_v23  ;;  %p1228_p4 = pnand %p1227_p3, %p1221_p0 }
  0x4b   :  { %991 = vmatmul.mubr.msk.f32.gmra.mrb[2].mxu0 %vm111_vm0, %v84_v22  ;;  %1061 = vmatmul.mubr.msk.f32.gmra.mrb[2].mxu1 %vm111_vm0, %v86_v5 }
  0x4c   :  { %992 = vmatprep.mubr.msk.f32.mxu0 %vm111_vm0, %v85_v23  ;;  %539 = vmatprep.mubr.f32.mxu1 %v1245_v25 }
  0x4f   :  { %993 = vmatmul.mubr.msk.f32.gmra.mrb[4].mxu0 %vm111_vm0, %v85_v23 }
  0x50   :  { %994 = vmatprep.mubr.msk.f32.mxu0 %vm111_vm0, %v86_v5 }
  0x53   :  { %995 = vmatmul.mubr.msk.f32.gmra.mrb[6].mxu0 %vm111_vm0, %v86_v5 }
  0x54   :  { %1071 = vmatprep.mubr.msk.f32.mxu0 %vm468_vm2, %v454_v24 }
  0x8b   :  { %v94_v26 = vpop.permute.xlu0 %93  ;;  %v104_v27 = vpop.permute.xlu1 %103 }
  0x91   :  { %v99_v28 = vpop.permute.xlu0 %98  ;;  %v109_v37 = vpop.permute.xlu1 %108 }
  0x95   :  { %v466_v11 = vpop.permute.xlu1 %465  ;;  %v461_v13 = vpop.permute.xlu0 %460 }
 0x11a   :  { %v334_v29 = vpop.f32.mrb[0].mxu0  ;;  %v1059_v30 = vpop.f32.mrb[0].mxu1 }
 0x11b   :  { %v429_v31 = vadd.f32 %v1059_v30, %v99_v28  ;;  %v336_v32 = vpop.f32.mrb[1].mxu0  ;;  %v423_v33 = vpop.f32.mrb[1].mxu1  ;;  %v335_v35 = vadd.f32 %v334_v29, %v94_v26 }
 0x11c   :  { %v424_v34 = vadd.f32 %v423_v33, %v94_v26  ;;  %v337_v38 = vadd.f32 %v336_v32, %v94_v26 }
 0x11d   :  { %v447_v36 = vmax.f32 %v429_v31, 0.0  ;;  %v442_v49 = vmax.f32 %v335_v35, 0.0 }
 0x11e   :  { %v444_v39 = vmax.f32 %v424_v34, 0.0  ;;  %v340_v40 = vpop.f32.mrb[2].mxu0  ;;  %v1062_v41 = vpop.f32.mrb[2].mxu1  ;;  %v443_v52 = vmax.f32 %v337_v38, 0.0 }
 0x11f   :  { %v341_v42 = vadd.f32 %v340_v40, %v99_v28  ;;  %v439_v43 = vadd.f32 %v1062_v41, %v109_v37  ;;  %v342_v44 = vpop.f32.mrb[3].mxu0  ;;  %v433_v45 = vpop.f32.mrb[3].mxu1 }
 0x120   :  { %v1185_v46 = vpack.c.bf16 %v447_v36, %v444_v39  ;;  %v343_v47 = vadd.f32 %v342_v44, %v99_v28  ;;  %v434_v48 = vadd.f32 %v433_v45, %v104_v27  ;;  %v638_v34 = vpop.permute.xlu0 %637  ;;  %v791_v39 = vpop.permute.xlu1 %790 }
 0x121   :  { %v445_v50 = vmax.f32 %v341_v42, 0.0  ;;  %v453_v51 = vmax.f32 %v439_v43, 0.0  ;;  %v820_v43 = vlaneseq }
 0x122   :  { %v446_v53 = vmax.f32 %v343_v47, 0.0  ;;  %v450_v54 = vmax.f32 %v434_v48, 0.0  ;;  %v346_v55 = vpop.f32.mrb[4].mxu0  ;;  %1186 = vmatprep.subr.bf16.mxu0 %v1185_v46 }
 0x123   :  { %v1179_v56 = vpack.c.bf16 %v445_v50, %v442_v49  ;;  %v348_v57 = vpop.f32.mrb[5].mxu0  ;;  %1188 = vmatpush3.bf16.msra.mxu0 %v1185_v46  ;;  %v347_v60 = vadd.f32 %v346_v55, %v104_v27  ;;  %v821_v47 = vshrl.u32 %v820_v43, 7  ;;  %vm874_vm4 = vcmp.lt.s32.totalorder %v820_v43, 384 }
 0x124   :  { %v1177_v58 = vpack.c.bf16 %v446_v53, %v443_v52  ;;  %v1189_v59 = vpack.c.bf16 %v453_v51, %v450_v54  ;;  %v349_v61 = vadd.f32 %v348_v57, %v104_v27 }
 0x125   :  { %v448_v3 = vmax.f32 %v347_v60, 0.0  ;;  %v822_v54 = vsub.s32 0, %v821_v47 }
 0x126   :  { %v352_v62 = vpop.f32.mrb[6].mxu0  ;;  %1178 = vmatprep.subr.bf16.mxu1 %v1177_v58  ;;  %1190 = vmatprep.subr.bf16.mxu0 %v1189_v59  ;;  %v449_v6 = vmax.f32 %v349_v61, 0.0 }
 0x127   :  { %v353_v63 = vadd.f32 %v352_v62, %v109_v37  ;;  %v354_v0 = vpop.f32.mrb[7].mxu0  ;;  %1180 = vmatpush1.bf16.msra.mxu1 %v1179_v56  ;;  %1192 = vmatpush3.bf16.msra.mxu0 %v1189_v59  ;;  %v818_v56 = vpop.permute.xlu0 %817 }
 0x128   :  { %v355_v2 = vadd.f32 %v354_v0, %v109_v37  ;;  %1197 = vmatprep.subr.bf16.mxu0 %v1246_v10  ;;  %v823_v61 = vrot.slane %v818_v56, %v822_v54 }
 0x129   :  { %v451_v4 = vmax.f32 %v353_v63, 0.0 }
 0x12a   :  { %v452_v7 = vmax.f32 %v355_v2, 0.0  ;;  %1072 = vmatmul.mubr.msk.f32.vlgmr.msra.gmra.mrb[8].mxu0 %vm468_vm2, %v455_v1 }
 0x12b   :  { %v1183_v8 = vpack.c.bf16 %v451_v4, %v448_v3  ;;  %1078 = vmatprep.mubr.msk.f32.mxu0 %vm1247_vm3, %v1245_v25 }
 0x12c   :  { %v1181_v9 = vpack.c.bf16 %v452_v7, %v449_v6 }
 0x12e   :  { %1182 = vmatprep.subr.bf16.mxu1 %v1181_v9 }
 0x12f   :  { %1184 = vmatpush1.bf16.msra.mxu1 %v1183_v8 }
 0x132   :  { %947 = vmatmul.mubr.msk.f32.vlgmr.msra.gmra.mrb[4].mxu1 %vm468_vm2, %v454_v24 }
 0x133   :  { %545 = vmatprep.mubr.f32.mxu1 %v1245_v25 }
 0x136   :  { %948 = vmatmul.mubr.msk.f32.gmra.mrb[6].mxu1 %vm468_vm2, %v455_v1 }
 0x137   :  { %707 = vmatprep.mubr.f32.mxu1 %v1245_v25 }
 0x1fd   :  { %v1073_v12 = vpop.f32.mrb[8].mxu0 }
 0x1fe   :  { %v624_v14 = vadd.f32 %v1073_v12, %v466_v11  ;;  %v618_v15 = vpop.f32.mrb[9].mxu0 }
 0x1ff   :  { %v619_v16 = vadd.f32 %v618_v15, %v461_v13 }
 0x200   :  { %v632_v17 = vmax.f32 %v624_v14, 0.0 }
 0x201   :  { %v629_v18 = vmax.f32 %v619_v16, 0.0 }
 0x203   :  { %v1198_v19 = vpack.c.bf16 %v632_v17, %v629_v18 }
 0x205   :  { %v541_v20 = vpop.f32.mrb[4].mxu1  ;;  %1199 = vmatpush3.bf16.msra.mxu0 %v1198_v19 }
 0x206   :  { %v543_v22 = vpop.f32.mrb[5].mxu1  ;;  %v542_v23 = vadd.f32 %v541_v20, %v461_v13 }
 0x207   :  { %v544_v5 = vadd.f32 %v543_v22, %v461_v13 }
 0x208   :  { %1079 = vmatmul.mubr.msk.f32.vlgmr.msra.gmra.mrb[10].mxu0 %vm111_vm0, %v633_v21  ;;  %v627_v28 = vmax.f32 %v542_v23, 0.0 }
 0x209   :  { %v547_v24 = vpop.f32.mrb[6].mxu1  ;;  %v628_v30 = vmax.f32 %v544_v5, 0.0 }
 0x20a   :  { %v548_v25 = vadd.f32 %v547_v24, %v466_v11  ;;  %v549_v26 = vpop.f32.mrb[7].mxu1 }
 0x20b   :  { %v550_v27 = vadd.f32 %v549_v26, %v466_v11 }
 0x20c   :  { %v630_v29 = vmax.f32 %v548_v25, 0.0 }
 0x20d   :  { %v631_v31 = vmax.f32 %v550_v27, 0.0 }
 0x20e   :  { %v1195_v32 = vpack.c.bf16 %v630_v29, %v627_v28 }
 0x20f   :  { %v1193_v33 = vpack.c.bf16 %v631_v31, %v628_v30 }
 0x211   :  { %1194 = vmatprep.subr.bf16.mxu1 %v1193_v33 }
 0x212   :  { %1196 = vmatpush1.bf16.msra.mxu1 %v1195_v32 }
 0x215   :  { %951 = vmatmul.mubr.msk.f32.vlgmr.msra.gmra.mrb[8].mxu1 %vm111_vm0, %v633_v21  ;;  %v1248_v21 = vmov 1966171168  }
 0x216   :  { %v850_v22 = vunpack.c.l.s4 %v1248_v21 }
 0x218   :  { %v851_v23 = vunpack.c.0.s8 %v850_v22 }
 0x21a   :  { %v854_v25 = vsub.s32 %v851_v23, %v821_v47 }
 0x2db   :  { %v780_v35 = vpop.f32.mrb[10].mxu0 }
 0x2dc   :  { %v781_v36 = vadd.f32 %v780_v35, %v638_v34  ;;  %v1080_v37 = vpop.f32.mrb[11].mxu0 }
 0x2de   :  { %v786_v38 = vmax.f32 %v781_v36, 0.0 }
 0x2e0   :  { %v795_v40 = vmul.f32 %v791_v39, %v786_v38 }
 0x2e2   :  { %v808_v41 = vrot.slane %v795_v40, 4 }
 0x2e4   :  { %v809_v42 = vadd.f32 %v808_v41, %v795_v40 }
 0x2e6   :  { %v810_v44 = vrot.slane %v809_v42, 2 }
 0x2e8   :  { %v811_v45 = vadd.f32 %v810_v44, %v809_v42  ;;  %v709_v46 = vpop.f32.mrb[8].mxu1 }
 0x2e9   :  { %v710_v48 = vadd.f32 %v709_v46, %v638_v34  ;;  %v711_v49 = vpop.f32.mrb[9].mxu1 }
 0x2ea   :  { %v712_v50 = vadd.f32 %v711_v49, %v638_v34  ;;  %v812_v51 = vrot.slane %v811_v45, 1 }
 0x2eb   :  { %v784_v52 = vmax.f32 %v710_v48, 0.0 }
 0x2ec   :  { %v785_v53 = vmax.f32 %v712_v50, 0.0  ;;  %v813_v58 = vadd.f32 %v812_v51, %v811_v45 }
 0x2ed   :  { %v793_v55 = vmul.f32 %v791_v39, %v784_v52 }
 0x2ee   :  { %v794_v57 = vmul.f32 %v791_v39, %v785_v53  ;;  %v826_v0 = vadd.f32 %v823_v61, %v813_v58 }
 0x2ef   :  { %v796_v59 = vrot.slane %v793_v55, 4 }
 0x2f0   :  { %v802_v60 = vrot.slane %v794_v57, 4  ;;  %v955_v6 = vmul.f32 -1.442695, %v826_v0 }
 0x2f1   :  { %v797_v62 = vadd.f32 %v796_v59, %v793_v55 }
 0x2f2   :  { %v803_v63 = vadd.f32 %v802_v60, %v794_v57  ;;  %1208 = vpow2.f32 %v955_v6 }
 0x2f3   :  { %v798_v1 = vrot.slane %v797_v62, 2 }
 0x2f4   :  { %v804_v2 = vrot.slane %v803_v63, 2 }
 0x2f5   :  { %v799_v3 = vadd.f32 %v798_v1, %v797_v62 }
 0x2f6   :  { %v805_v4 = vadd.f32 %v804_v2, %v803_v63 }
 0x2f7   :  { %v800_v7 = vrot.slane %v799_v3, 1 }
 0x2f8   :  { %v806_v8 = vrot.slane %v805_v4, 1 }
 0x2f9   :  { %v801_v9 = vadd.f32 %v800_v7, %v799_v3 }
 0x2fa   :  { %v807_v10 = vadd.f32 %v806_v8, %v805_v4 }
 0x2fb   :  { %v824_v11 = vadd.f32 %v823_v61, %v801_v9 }
 0x2fc   :  { %v825_v12 = vadd.f32 %v823_v61, %v807_v10  ;;  %v1209_v15 = vpop.eup %1208 }
 0x2fd   :  { %v953_v13 = vmul.f32 -1.442695, %v824_v11  ;;  %v838_v16 = vadd.f32 1.0, %v1209_v15 }
 0x2fe   :  { %v954_v14 = vmul.f32 -1.442695, %v825_v12 }
 0x2ff   :  { %1210 = vpow2.f32 %v953_v13 }
 0x300   :  { %1212 = vpow2.f32 %v954_v14 }
 0x301   :  { %1214 = vrcp.f32 %v838_v16 }
 0x309   :  { %v1211_v17 = vpop.eup %1210 }
 0x30a   :  { %v1213_v18 = vpop.eup %1212  ;;  %v836_v19 = vadd.f32 1.0, %v1211_v17 }
 0x30b   :  { %v837_v20 = vadd.f32 1.0, %v1213_v18  ;;  %v1215_v5 = vpop.eup %1214 }
 0x30c   :  { %1216 = vrcp.f32 %v836_v19  ;;  %v862_v29 = vrot.slane %v1215_v5, %v854_v25 }
 0x30d   :  { %1218 = vrcp.f32 %v837_v20 }
 0x316   :  { %v1217_v24 = vpop.eup %1216 }
 0x317   :  { %v1219_v26 = vpop.eup %1218 }
 0x318   :  { %v848_v27 = vcombine.low %v1217_v24, %v1219_v26 }
 0x31a   :  { %v855_v28 = vrot.slane %v848_v27, %v854_v25 }
 0x31c   :  { %v863_v30 = vcombine.low %v855_v28, %v862_v29 }
 0x31e   :  { %v870_v31 = vrot.slane %v863_v30, %v854_v25 }
 0x320   :  { %876 = vst.msk [vmem:[#allocation3] sm:$0x7] %vm874_vm4, %v870_v31 }
 0x321   :  { %1231 = shalt.err (!%p1228_p4)
}
 0x322   :  { %s1232_s6 = scalar_lea.hbm %s1610_s9, 48 }
 0x323   :  { %p1233_p5 = scmp.ne.s32.totalorder %s1610_s9, %s1232_s6  ;;  %p1236_p6 = scmp.lt.u32.totalorder %s1232_s6, %s1610_s9 }
 0x325   :  { %p1238_p7 = pnand %p1236_p6, %p1233_p5 }
 0x327   :  { %1241 = shalt.err (!%p1238_p7)
}
 0x328   :  { %886 = dma.vmem_to_hbm [thread:$0]  %s884_s15, 48, %s1610_s9, [#allocation4]  }
 0x329   :  { %1242 = dma.done.wait [#allocation4], 48  }
 0x32a   :  { %1243 = vsyncadd [#allocation4], 4294967248 }
 0x32b   :  { %890 = vsyncpa [#allocation4], 1 }

</bundles_post_ra>
